<compile_context>
chip_gen: v5e
topology: v5e:2x2
jax: 0.10.0
libtpu: 0.0.40
codegen_flags: <defaults>
</compile_context>

<pallas_src>
import functools
import math

import jax
import jax.numpy as jnp
from jax.experimental import pallas as pl
from jax.experimental.pallas import tpu as pltpu


# ----------------------------------------------------------------------------
# Buffer setup (matches nn.Module.__init__, plain JAX)
# ----------------------------------------------------------------------------
def make_positional_encoding(d_model, max_len=5000, dtype=jnp.float32):
    position = jnp.arange(max_len, dtype=jnp.float32)[:, None]            # (L, 1)
    div_term = jnp.exp(
        jnp.arange(0, d_model, 2, dtype=jnp.float32)
        * -(math.log(10000.0) / d_model)
    )                                                                     # (D/2,)
    angles = position * div_term                                          # (L, D/2)
    pe = jnp.zeros((max_len, d_model), dtype=jnp.float32)
    pe = pe.at[:, 0::2].set(jnp.sin(angles))
    pe = pe.at[:, 1::2].set(jnp.cos(angles))
    return pe.astype(dtype)                                               # (L, D)


# ----------------------------------------------------------------------------
# Kernels
# ----------------------------------------------------------------------------
def _add_pe_kernel(x_ref, pe_ref, o_ref):
    # x_ref: (TB, TL); pe_ref: (1, TL) -> broadcast add over the batch rows.
    o_ref[...] = x_ref[...] + pe_ref[...]


def _hash_u32(x):
    # murmur3 finalizer: cheap, portable (plain 32-bit integer ops on the VPU).
    x = x ^ (x >> 16)
    x = x * jnp.uint32(0x85EBCA6B)
    x = x ^ (x >> 13)
    x = x * jnp.uint32(0xC2B2AE35)
    x = x ^ (x >> 16)
    return x


def _add_pe_dropout_kernel(seed_ref, x_ref, pe_ref, o_ref, *, p, tb, tl, lanes_total):
    y = x_ref[...] + pe_ref[...]

    # Counter-based Bernoulli mask keyed on the *global* flattened element
    # index, so the realized mask is independent of the tiling/grid layout.
    row0 = pl.program_id(1) * tb          # grid = (lane_tiles, batch_tiles)
    col0 = pl.program_id(0) * tl
    rows = jax.lax.broadcasted_iota(jnp.int32, (tb, tl), 0) + row0
    cols = jax.lax.broadcasted_iota(jnp.int32, (tb, tl), 1) + col0
    flat_idx = rows * lanes_total + cols

    seed_u = seed_ref[0].astype(jnp.uint32) * jnp.uint32(2654435761)
    bits = _hash_u32(flat_idx.astype(jnp.uint32) + seed_u)

    threshold = jnp.uint32(min(int(p * (2 ** 32)), 2 ** 32 - 1))
    keep = bits >= threshold              # P(keep) = 1 - p
    scale = jnp.asarray(1.0 / (1.0 - p), dtype=y.dtype)
    o_ref[...] = jnp.where(keep, y * scale, jnp.zeros_like(y))


# ----------------------------------------------------------------------------
# Tiling heuristic: ~2 MiB lane-dense blocks, (8, 128)-legal.
# ----------------------------------------------------------------------------
def _pick_tiles(B, L, itemsize, target_bytes=2 * 1024 * 1024):
    if L % 128 == 0:
        tb = min(B, 8) if (B % 8 == 0) else B
        max_lanes = max(128, (target_bytes // (tb * itemsize)) // 128 * 128)
        tl = min(L, max_lanes)
    else:
        # Lane dim not 128-aligned: block must span the full lane extent.
        tb = min(B, 8) if (B % 8 == 0) else B
        tl = L
    return tb, tl


# ----------------------------------------------------------------------------
# Wrapper
# ----------------------------------------------------------------------------
def positional_encoding_forward(x, pe, *, dropout_p, training, seed=0):
    """x: (B, S, D) float array; pe: (max_len, D) buffer."""
    B, S, D = x.shape
    L = S * D

    apply_dropout = bool(training) and float(dropout_p) > 0.0
    if apply_dropout and float(dropout_p) >= 1.0:
        # Degenerate config: nn.Dropout(p=1.0) zeroes everything.
        return jnp.zeros_like(x)

    # Glue: lane-dense 2-D views; pe pre-cast to x.dtype (no in-kernel casts).
    x_flat = x.reshape(B, L)
    pe_flat = pe[:S, :].astype(x.dtype).reshape(1, L)

    tb, tl = _pick_tiles(B, L, x.dtype.itemsize)
    # Lane-tile axis outermost -> the pe block index is constant across the
    # inner batch loop, so pe stays resident in VMEM (fetched once per l-tile).
    grid = (pl.cdiv(L, tl), pl.cdiv(B, tb))

    out_shape = jax.ShapeDtypeStruct((B, L), x.dtype)
    cparams = pltpu.CompilerParams(
        dimension_semantics=("parallel", "parallel"),
    )

    if apply_dropout:
        kernel = functools.partial(
            _add_pe_dropout_kernel,
            p=float(dropout_p), tb=tb, tl=tl, lanes_total=L,
        )
        grid_spec = pltpu.PrefetchScalarGridSpec(
            num_scalar_prefetch=1,                         # seed lives in SMEM
            grid=grid,
            in_specs=[
                pl.BlockSpec((tb, tl), lambda l, b, seed: (b, l)),
                pl.BlockSpec((1, tl), lambda l, b, seed: (0, l)),
            ],
            out_specs=pl.BlockSpec((tb, tl), lambda l, b, seed: (b, l)),
        )
        seed_arr = jnp.array([seed], dtype=jnp.int32)
        y = pl.pallas_call(
            kernel, out_shape=out_shape, grid_spec=grid_spec,
            compiler_params=cparams,
        )(seed_arr, x_flat, pe_flat)
    else:
        grid_spec = pltpu.PrefetchScalarGridSpec(
            num_scalar_prefetch=0,
            grid=grid,
            in_specs=[
                pl.BlockSpec((tb, tl), lambda l, b: (b, l)),
                pl.BlockSpec((1, tl), lambda l, b: (0, l)),
            ],
            out_specs=pl.BlockSpec((tb, tl), lambda l, b: (b, l)),
        )
        y = pl.pallas_call(
            _add_pe_kernel, out_shape=out_shape, grid_spec=grid_spec,
            compiler_params=cparams,
        )(x_flat, pe_flat)

    return y.reshape(B, S, D)


# ----------------------------------------------------------------------------
# Demo / correctness check
# ----------------------------------------------------------------------------
if __name__ == "__main__":
    d_model = 32
    max_len = 5000
    dropout_p = 0.1
    B, S = 2, 8

    key = jax.random.PRNGKey(0)
    x = jax.random.normal(key, (B, S, d_model), dtype=jnp.float32)
    pe = make_positional_encoding(d_model, max_len=max_len)

    y_ref = x + pe[None, :S, :]

    # Eval-mode forward (dropout is identity) — verify vs reference.
    y_eval = positional_encoding_forward(x, pe, dropout_p=dropout_p, training=False)
    y_eval = jax.block_until_ready(y_eval)
    assert y_eval.shape == (B, S, d_model)
    assert jnp.allclose(y_eval, y_ref, atol=1e-6), "eval-mode mismatch"

    # Training-mode forward (dropout active, deterministic seed).
    y_train = positional_encoding_forward(
        x, pe, dropout_p=dropout_p, training=True, seed=0
    )
    y_train = jax.block_until_ready(y_train)
    assert y_train.shape == (B, S, d_model)
    # Every element is either exactly dropped (0) or (x+pe)/(1-p).
    dropped = jnp.isclose(y_train, 0.0, atol=0.0)
    kept_ok = jnp.isclose(y_train * (1.0 - dropout_p), y_ref, atol=1e-5, rtol=1e-5)
    assert bool(jnp.all(dropped | kept_ok)), "training-mode dropout mismatch"

    print("KERNEL_OK")
</pallas_src>

<mosaic_0001>
module attributes {stable_mosaic.version = 11 : i64} {
  func.func @_add_pe_kernel(%arg0: i32, %arg1: i32, %arg2: memref<2x256xf32, #tpu.memory_space<vmem>>, %arg3: memref<1x256xf32, #tpu.memory_space<vmem>>, %arg4: memref<2x256xf32, #tpu.memory_space<vmem>>) attributes {dimension_semantics = [#tpu.dimension_semantics<parallel>, #tpu.dimension_semantics<parallel>], iteration_bounds = array<i64: 1, 1>, scalar_prefetch = 0 : i64, scratch_operands = 0 : i64, tpu.core_type = #tpu.core_type<tc>, window_params = [{transform_indices = @transform_0, window_bounds = array<i64: 2, 256>}, {transform_indices = @transform_1, window_bounds = array<i64: 1, 256>}, {transform_indices = @transform_2, window_bounds = array<i64: 2, 256>}]} {
    %c0 = arith.constant 0 : index
    %c0_0 = arith.constant 0 : index
    %0 = vector.load %arg2[%c0, %c0_0] : memref<2x256xf32, #tpu.memory_space<vmem>>, vector<2x256xf32>
    %c0_1 = arith.constant 0 : index
    %c0_2 = arith.constant 0 : index
    %1 = vector.load %arg3[%c0_1, %c0_2] : memref<1x256xf32, #tpu.memory_space<vmem>>, vector<1x256xf32>
    %2 = vector.broadcast %1 : vector<1x256xf32> to vector<2x256xf32>
    %3 = arith.addf %0, %2 : vector<2x256xf32>
    %c0_3 = arith.constant 0 : index
    %c0_4 = arith.constant 0 : index
    %4 = vector.load %arg4[%c0_3, %c0_4] : memref<2x256xf32, #tpu.memory_space<vmem>>, vector<2x256xf32>
    tpu.vector_store %arg4[%c0_3, %c0_4], %3 {strides = array<i32>} : memref<2x256xf32, #tpu.memory_space<vmem>>, vector<2x256xf32>,
    return
  }
  func.func @transform_0(%arg0: i32, %arg1: i32) -> (i32, i32) {
    %c0_i32 = arith.constant 0 : i32
    return %arg1, %arg0 : i32, i32
  }
  func.func @transform_1(%arg0: i32, %arg1: i32) -> (i32, i32) {
    %c0_i32 = arith.constant 0 : i32
    %c0_i32_0 = arith.constant 0 : i32
    return %c0_i32, %arg0 : i32, i32
  }
  func.func @transform_2(%arg0: i32, %arg1: i32) -> (i32, i32) {
    %c0_i32 = arith.constant 0 : i32
    return %arg1, %arg0 : i32, i32
  }
}

</mosaic_0001>

<bundles_post_ra>
// kernel: tpu_custom_call.1
= control target key start
LH: loop header
LB: loop body
LE: loop exit
PB: predicated region body
PF: predicated region fallthrough
CT: control target
= control target key end

     0   :  { %7 = vsyncpa [#allocation3], 0  ;;  %s177_s0 = inlined_call_operand.hbm [shape: f32[2,256], index: 0, kind: input, shape index: {}]   ;;  %s178_s1 = inlined_call_operand.hbm [shape: f32[1,256], index: 1, kind: input, shape index: {}]   ;;  %s179_s2 = inlined_call_operand.hbm [shape: f32[2,256], index: 2, kind: output, shape index: {}]  }
   0x1   :  { %8 = vsyncpa [#allocation6], 0 }
   0x2   :  { %9 = vsyncpa [#allocation4], 0  ;;  %s15_s11 = sshll.u32 %s177_s0, 4  ;;  %s150_s12 = smov [#allocation2]   ;;  %s16_s11 = int_to_ptr.hbm [resolvable:$true] %s15_s11 }
   0x3   :  { %s17_s13 = sshll.u32 %s150_s12, 4  ;;  %s26_s16 = sshll.u32 %s178_s1, 4  ;;  %s18_s13 = int_to_ptr.vmem [resolvable:$true] %s17_s13  ;;  %s27_s16 = int_to_ptr.hbm [resolvable:$true] %s26_s16 }
   0x4   :  { %20 = dma.hbm_to_vmem [thread:$0]  %s16_s11, 64, %s18_s13, [#allocation3]  }
   0x5   :  { %s151_s17 = smov [#allocation5]  }
   0x6   :  { %s28_s18 = sshll.u32 %s151_s17, 4  ;;  %s29_s18 = int_to_ptr.vmem [resolvable:$true] %s28_s18 }
   0x7   :  { %31 = dma.hbm_to_vmem [thread:$0]  %s27_s16, 32, %s29_s18, [#allocation6]  }
   0x8   :  { %144 = dma.done.wait [#allocation3], 64  }
   0x9   :  { %145 = vsyncadd [#allocation3], 4294967232 }
   0xa   :  { %146 = dma.done.wait [#allocation6], 32  }
   0xb   :  { %147 = vsyncadd [#allocation6], 4294967264  ;;  %v41_v0 = vld [vmem:[#allocation5] sm:$0x3]  ;;  %vm46_vm0 = vcmask 1041408   ;;  %s152_s0 = smov [#allocation7]  }
   0xc   :  { %v43_v1 = vperm.slane %v41_v0, 0  ;;  %v44_v2 = vperm.slane %v41_v0, 1  ;;  %v40_v3 = vld [vmem:[#allocation2] sm:$0xf]  ;;  %s56_s19 = sshll.u32 %s152_s0, 4  ;;  %s58_s21 = sshll.u32 %s179_s2, 4  ;;  %s57_s19 = int_to_ptr.vmem [resolvable:$true] %s56_s19  ;;  %s59_s21 = int_to_ptr.hbm [resolvable:$true] %s58_s21 }
   0xe   :  { %v45_v4 = vrot.slane %v44_v2, 6 }
  0x10   :  { %v47_v5 = vsel %vm46_vm0, %v43_v1, %v45_v4 }
  0x11   :  { %v49_v6 = vadd.f32 %v47_v5, %v40_v3 }
  0x13   :  { %50 = vst [vmem:[#allocation7] sm:$0xf] %v49_v6 }
  0x14   :  { %61 = dma.vmem_to_hbm [thread:$0]  %s57_s19, 64, %s59_s21, [#allocation4]  }
  0x15   :  { %148 = dma.done.wait [#allocation4], 64  }
  0x16   :  { %149 = vsyncadd [#allocation4], 4294967232 }
  0x17   :  { %66 = vsyncpa [#allocation3], 1 }
  0x18   :  { %67 = vsyncpa [#allocation6], 1 }
  0x19   :  { %68 = vsyncpa [#allocation4], 1 }

</bundles_post_ra>
